<compile_context>
chip_gen: v7x
topology: tpu7x:2x2x1
jax: 0.10.0
libtpu: 0.0.40
codegen_flags: <defaults>
</compile_context>

<pallas_src>
import functools

import jax
import jax.numpy as jnp
import numpy as np
from jax.experimental import pallas as pl
from jax.experimental.pallas import tpu as pltpu


def _shuffle_block_kernel(x_ref, w1_ref, b1_ref, dw_ref, bdw_ref,
                          w2_ref, b2_ref, p1_ref, mask_ref, o_ref, *, width):
    """Fused Shuffle_Block (stride=1) for one (bt, C, HWp) batch tile.

    x_ref   : (bt, C, HWp)  bf16 input, channels on sublanes, spatial on lanes
    w1_ref  : (bf, C)       bf16 1x1 conv #1 (BN folded); zero cols for x1 half
    b1_ref  : (bf, 1)       f32 folded BN bias #1
    dw_ref  : (bf, 9)       f32 3x3 depthwise weights (BN folded), tap k = kh*3+kw
    bdw_ref : (bf, 1)       f32 folded BN bias for the depthwise conv
    w2_ref  : (C, bf)       bf16 1x1 conv #2 (BN folded); rows 2i+1 = w2[i], even 0
    b2_ref  : (C, 1)        f32 bias #2 expanded the same way (even rows 0)
    p1_ref  : (C, C)        bf16 0/1 placement: row 2i has a 1 at column i (i < bf)
    mask_ref: (9, HWp)      f32 {0,1} tap-validity masks (image edges + lane pad)
    o_ref   : (bt, C, HWp)  bf16 channel-shuffled output
    """
    f32 = jnp.float32
    xin = x_ref[...]                       # (bt, C, HWp) bf16
    w1x = w1_ref[...]
    b1 = b1_ref[...][None]                 # (1, bf, 1)
    dwm = dw_ref[...]
    bdw = bdw_ref[...][None]               # (1, bf, 1)
    w2s = w2_ref[...]
    b2s = b2_ref[...][None]                # (1, C, 1)
    p1x = p1_ref[...]
    masks = mask_ref[...]
    hwp = xin.shape[-1]

    # Hoisted tap tables: mask * depthwise weight, once per grid step.
    mw = [dwm[:, k:k + 1] * masks[k:k + 1, :] for k in range(9)]   # 9 x (bf, HWp)

    # --- 1x1 conv #1 + BN + ReLU (bf16 operands, f32 MXU accumulation) ---
    y1 = jnp.einsum("oc,bcl->bol", w1x, xin, preferred_element_type=f32)
    y1 = jnp.maximum(y1 + b1, 0.0)                                 # (bt, bf, HWp) f32

    # --- 3x3 depthwise conv (stride 1, pad 1) + BN via lane rolls, f32 accum ---
    offs = [(dh, dwo) for dh in (-1, 0, 1) for dwo in (-1, 0, 1)]
    acc = y1 * mw[4][None]                                         # center tap
    for k, (dh, dwo) in enumerate(offs):
        if dh == 0 and dwo == 0:
            continue
        d = dh * width + dwo                                       # flattened offset
        acc = acc + pltpu.roll(y1, (-d) % hwp, axis=2) * mw[k][None]
    y2 = acc + bdw

    # --- 1x1 conv #2 + BN + ReLU with channel_shuffle(groups=2) folded in ---
    # Odd output rows get relu(w2 @ y2 + b2); even rows are exactly zero here
    # (zero weight rows / zero bias, relu(0)=0) and receive x1 via the 0/1
    # placement matmul on the full input (no channel slicing in the kernel).
    y3 = jnp.einsum("oc,bcl->bol", w2s, y2.astype(xin.dtype),
                    preferred_element_type=f32)
    y3 = jnp.maximum(y3 + b2s, 0.0)
    out = y3 + jnp.einsum("oc,bcl->bol", p1x, xin, preferred_element_type=f32)

    o_ref[...] = out.astype(o_ref.dtype)


def _tap_masks(H, W, HWp):
    """(9, HWp) {0,1} f32 validity masks for the 3x3 depthwise taps (pad lanes 0)."""
    h = np.arange(H)[:, None]
    w = np.arange(W)[None, :]
    masks = []
    for dh in (-1, 0, 1):
        for dwo in (-1, 0, 1):
            ok = (h + dh >= 0) & (h + dh < H) & (w + dwo >= 0) & (w + dwo < W)
            m = np.zeros(HWp, np.float32)
            m[:H * W] = ok.astype(np.float32).reshape(H * W)
            masks.append(m)
    return jnp.asarray(np.stack(masks))


def _vmem_capacity_bytes():
    """Detected per-core VMEM capacity; conservative v7x default on failure."""
    try:
        info = pltpu.get_tpu_info()
        cap = int(getattr(info, "vmem_capacity_bytes", 0))
        if cap > 0:
            return cap
    except Exception:
        pass
    return 64 << 20


def _per_image_vmem_bytes(C, bf, HWp):
    in_img = C * HWp * 2                    # bf16 input tile slab
    out_img = C * HWp * 2                   # bf16 output tile slab
    interm = 10 * bf * HWp * 4              # f32 y1/acc/y2/y3/out live-set estimate
    return 2 * in_img + 2 * out_img + interm   # in/out double-buffered


def _pick_batch_tile(B, C, bf, HWp, vmem_cap):
    """Batch tile sized against the real VMEM budget; keep enough grid steps for
    double-buffering (>=2 per TensorCore on v7x, >=3 total elsewhere)."""
    per_img = _per_image_vmem_bytes(C, bf, HWp)
    budget = max(4 << 20, int(0.7 * vmem_cap) - (4 << 20))
    bt = max(1, min(B, budget // max(1, per_img)))
    min_steps = 4 if vmem_cap <= (72 << 20) else 3     # small VMEM ⇒ v7x-class chip
    bt = min(bt, max(1, B // min(B, min_steps)))
    while B % bt:
        bt -= 1
    return bt


def shuffle_block_forward(x_nchw, params, batch_tile=None):
    """Shuffle_Block(inp, oup=inp, stride=1).forward as a fused Pallas kernel.

    Returns a bfloat16 NCHW tensor (activation I/O is bf16 by design)."""
    B, C, H, W = x_nchw.shape
    bf = C // 2
    HW = H * W
    HWp = ((HW + 127) // 128) * 128
    cdt = jnp.bfloat16

    # Free reshape: channels stay on the sublane axis, spatial flattens to lanes.
    x = x_nchw.astype(cdt).reshape(B, C, HW)
    if HWp != HW:
        x = jnp.pad(x, ((0, 0), (0, 0), (0, HWp - HW)))

    # Expanded parameter prep (tiny, constant-sized):
    #  - w1x: conv #1 over the *full* channel axis (zero cols for the x1 half)
    #  - w2s/b2s: conv #2 with channel_shuffle(groups=2) folded in (odd rows)
    #  - p1x: 0/1 placement of x1 onto even output channels
    w1x = jnp.zeros((bf, C), jnp.float32).at[:, bf:].set(params["w1"]).astype(cdt)
    b1 = params["b1"]
    dw = params["dw"]
    bdw = params["bdw"]
    w2s = jnp.zeros((C, bf), jnp.float32).at[1::2, :].set(params["w2"]).astype(cdt)
    b2s = jnp.zeros((C, 1), jnp.float32).at[1::2, :].set(params["b2"])
    p1x = jnp.zeros((C, C), jnp.float32).at[
        2 * jnp.arange(bf), jnp.arange(bf)].set(1.0).astype(cdt)
    masks = _tap_masks(H, W, HWp)

    vmem_cap = _vmem_capacity_bytes()
    if batch_tile is None:
        batch_tile = _pick_batch_tile(B, C, bf, HWp, vmem_cap)
    bt = batch_tile
    assert B % bt == 0
    grid = (B // bt,)

    const_bytes = (bf * C * 2 + bf * 4 + bf * 9 * 4 + bf * 4
                   + C * bf * 2 + C * 4 + C * C * 2 + 9 * HWp * 4) * 2
    needed = bt * _per_image_vmem_bytes(C, bf, HWp) + const_bytes + (2 << 20)
    vmem_limit = int(max(16 << 20, min(needed, vmem_cap - (4 << 20))))

    flops = int(B * HWp * (2 * bf * C + 18 * bf + 2 * C * bf + 2 * C * C))
    bytes_accessed = int(2 * B * C * HWp * 2 + const_bytes)

    kernel = functools.partial(_shuffle_block_kernel, width=W)

    grid_spec = pltpu.PrefetchScalarGridSpec(
        num_scalar_prefetch=0,
        grid=grid,
        in_specs=[
            pl.BlockSpec((bt, C, HWp), lambda i: (i, 0, 0)),   # x
            pl.BlockSpec((bf, C), lambda i: (0, 0)),           # w1 (expanded)
            pl.BlockSpec((bf, 1), lambda i: (0, 0)),           # b1
            pl.BlockSpec((bf, 9), lambda i: (0, 0)),           # dw
            pl.BlockSpec((bf, 1), lambda i: (0, 0)),           # bdw
            pl.BlockSpec((C, bf), lambda i: (0, 0)),           # w2 (shuffled)
            pl.BlockSpec((C, 1), lambda i: (0, 0)),            # b2 (shuffled)
            pl.BlockSpec((C, C), lambda i: (0, 0)),            # x1 placement
            pl.BlockSpec((9, HWp), lambda i: (0, 0)),          # edge masks
        ],
        out_specs=pl.BlockSpec((bt, C, HWp), lambda i: (i, 0, 0)),
    )

    y = pl.pallas_call(
        kernel,
        out_shape=jax.ShapeDtypeStruct((B, C, HWp), cdt),
        grid_spec=grid_spec,
        compiler_params=pltpu.CompilerParams(
            dimension_semantics=("parallel",),
            vmem_limit_bytes=vmem_limit,
        ),
        cost_estimate=pl.CostEstimate(
            flops=flops, transcendentals=0, bytes_accessed=bytes_accessed),
    )(x, w1x, b1, dw, bdw, w2s, b2s, p1x, masks)

    if HWp != HW:
        y = y[..., :HW]
    return y.reshape(B, C, H, W)


def reference_forward(x, p):
    """Plain-JAX f32 NCHW reference of the same forward (for correctness check)."""
    B, C, H, W = x.shape
    bf = C // 2
    x1, x2 = x[:, :bf], x[:, bf:]
    y1 = jax.nn.relu(jnp.einsum("oc,bchw->bohw", p["w1"], x2)
                     + p["b1"].reshape(1, bf, 1, 1))
    yp = jnp.pad(y1, ((0, 0), (0, 0), (1, 1), (1, 1)))
    dw = p["dw"].reshape(bf, 3, 3)
    acc = jnp.zeros_like(y1)
    for kh in range(3):
        for kw in range(3):
            acc = acc + yp[:, :, kh:kh + H, kw:kw + W] * dw[:, kh, kw].reshape(1, bf, 1, 1)
    y2 = acc + p["bdw"].reshape(1, bf, 1, 1)
    y3 = jax.nn.relu(jnp.einsum("oc,bchw->bohw", p["w2"], y2)
                     + p["b2"].reshape(1, bf, 1, 1))
    out = jnp.concatenate([x1, y3], axis=1)
    # channel_shuffle(groups=2)
    out = out.reshape(B, 2, bf, H, W).transpose(0, 2, 1, 3, 4).reshape(B, C, H, W)
    return out


def make_params(key, bf, eps=1e-5):
    """Deterministically init Conv/BN params (eval mode) and fold BN into convs."""
    ks = jax.random.split(key, 16)

    def bn_fold(k0, k1, k2, k3):
        g = 1.0 + 0.1 * jax.random.normal(k0, (bf,), jnp.float32)
        b = 0.1 * jax.random.normal(k1, (bf,), jnp.float32)
        m = 0.1 * jax.random.normal(k2, (bf,), jnp.float32)
        v = jnp.abs(jax.random.normal(k3, (bf,), jnp.float32)) + 0.5
        s = g / jnp.sqrt(v + eps)
        return s, b - m * s

    # Conv2d(bf, bf, 1, bias=False), weight (out, in)
    w1_raw = 0.2 * jax.random.normal(ks[0], (bf, bf), jnp.float32)
    s1, bias1 = bn_fold(ks[1], ks[2], ks[3], ks[4])
    w1 = w1_raw * s1[:, None]
    b1 = bias1.reshape(bf, 1)

    # depthwise Conv2d(bf, bf, 3, groups=bf, bias=False), weight (bf, 3, 3)
    dw_raw = 0.2 * jax.random.normal(ks[5], (bf, 3, 3), jnp.float32)
    sd, biasd = bn_fold(ks[6], ks[7], ks[8], ks[9])
    dw = (dw_raw * sd[:, None, None]).reshape(bf, 9)
    bdw = biasd.reshape(bf, 1)

    w2_raw = 0.2 * jax.random.normal(ks[10], (bf, bf), jnp.float32)
    s2, bias2 = bn_fold(ks[11], ks[12], ks[13], ks[14])
    w2 = w2_raw * s2[:, None]
    b2 = bias2.reshape(bf, 1)

    return dict(w1=w1, b1=b1, dw=dw, bdw=bdw, w2=w2, b2=b2)


if __name__ == "__main__":
    key = jax.random.PRNGKey(0)
    k_x, k_p = jax.random.split(key)

    B, C, H, W = 2, 16, 16, 16       # inp = oup = 16, stride = 1
    bf = C // 2
    x = jax.random.normal(k_x, (B, C, H, W), jnp.float32)
    params = make_params(k_p, bf)

    out = jax.block_until_ready(shuffle_block_forward(x, params))

    # Reference computed in f32 on bf16-rounded activations / 1x1-conv weights
    # (mirrors the kernel's quantization); loose tolerance absorbs the extra
    # bf16 rounding of y2 and of the bf16 output.
    f32 = jnp.float32
    xq = x.astype(jnp.bfloat16).astype(f32)
    pq = dict(params)
    pq["w1"] = params["w1"].astype(jnp.bfloat16).astype(f32)
    pq["w2"] = params["w2"].astype(jnp.bfloat16).astype(f32)
    ref = reference_forward(xq, pq)

    assert out.shape == (B, C, H, W)
    assert out.dtype == jnp.bfloat16
    assert jnp.allclose(out.astype(f32), ref, rtol=5e-2, atol=5e-2), \
        "mismatch vs reference"

    print("KERNEL_OK")
</pallas_src>

<mosaic_0001>
module attributes {stable_mosaic.version = 11 : i64} {
  func.func @_shuffle_block_kernel(%arg0: i32, %arg1: memref<1x16x256xbf16, #tpu.memory_space<vmem>>, %arg2: memref<8x16xbf16, #tpu.memory_space<vmem>>, %arg3: memref<8x1xf32, #tpu.memory_space<vmem>>, %arg4: memref<8x9xf32, #tpu.memory_space<vmem>>, %arg5: memref<8x1xf32, #tpu.memory_space<vmem>>, %arg6: memref<16x8xbf16, #tpu.memory_space<vmem>>, %arg7: memref<16x1xf32, #tpu.memory_space<vmem>>, %arg8: memref<16x16xbf16, #tpu.memory_space<vmem>>, %arg9: memref<9x256xf32, #tpu.memory_space<vmem>>, %arg10: memref<1x16x256xbf16, #tpu.memory_space<vmem>>) attributes {dimension_semantics = [#tpu.dimension_semantics<parallel>], iteration_bounds = array<i64: 2>, scalar_prefetch = 0 : i64, scratch_operands = 0 : i64, tpu.core_type = #tpu.core_type<tc>, window_params = [{transform_indices = @transform_0, window_bounds = array<i64: 1, 16, 256>}, {pipeline_mode = #tpu.pipeline_mode<synchronous>, transform_indices = @transform_1, window_bounds = array<i64: 8, 16>}, {pipeline_mode = #tpu.pipeline_mode<synchronous>, transform_indices = @transform_2, window_bounds = array<i64: 8, 1>}, {pipeline_mode = #tpu.pipeline_mode<synchronous>, transform_indices = @transform_3, window_bounds = array<i64: 8, 9>}, {pipeline_mode = #tpu.pipeline_mode<synchronous>, transform_indices = @transform_4, window_bounds = array<i64: 8, 1>}, {pipeline_mode = #tpu.pipeline_mode<synchronous>, transform_indices = @transform_5, window_bounds = array<i64: 16, 8>}, {pipeline_mode = #tpu.pipeline_mode<synchronous>, transform_indices = @transform_6, window_bounds = array<i64: 16, 1>}, {pipeline_mode = #tpu.pipeline_mode<synchronous>, transform_indices = @transform_7, window_bounds = array<i64: 16, 16>}, {pipeline_mode = #tpu.pipeline_mode<synchronous>, transform_indices = @transform_8, window_bounds = array<i64: 9, 256>}, {transform_indices = @transform_9, window_bounds = array<i64: 1, 16, 256>}]} {
    %c0 = arith.constant 0 : index
    %c0_0 = arith.constant 0 : index
    %c0_1 = arith.constant 0 : index
    %0 = vector.load %arg1[%c0, %c0_0, %c0_1] : memref<1x16x256xbf16, #tpu.memory_space<vmem>>, vector<1x16x256xbf16>
    %c0_2 = arith.constant 0 : index
    %c0_3 = arith.constant 0 : index
    %1 = vector.load %arg2[%c0_2, %c0_3] : memref<8x16xbf16, #tpu.memory_space<vmem>>, vector<8x16xbf16>
    %c0_4 = arith.constant 0 : index
    %c0_5 = arith.constant 0 : index
    %2 = vector.load %arg3[%c0_4, %c0_5] : memref<8x1xf32, #tpu.memory_space<vmem>>, vector<8x1xf32>
    %3 = vector.shape_cast %2 : vector<8x1xf32> to vector<1x8x1xf32>
    %c0_6 = arith.constant 0 : index
    %c0_7 = arith.constant 0 : index
    %4 = vector.load %arg4[%c0_6, %c0_7] : memref<8x9xf32, #tpu.memory_space<vmem>>, vector<8x9xf32>
    %c0_8 = arith.constant 0 : index
    %c0_9 = arith.constant 0 : index
    %5 = vector.load %arg5[%c0_8, %c0_9] : memref<8x1xf32, #tpu.memory_space<vmem>>, vector<8x1xf32>
    %6 = vector.shape_cast %5 : vector<8x1xf32> to vector<1x8x1xf32>
    %c0_10 = arith.constant 0 : index
    %c0_11 = arith.constant 0 : index
    %7 = vector.load %arg6[%c0_10, %c0_11] : memref<16x8xbf16, #tpu.memory_space<vmem>>, vector<16x8xbf16>
    %c0_12 = arith.constant 0 : index
    %c0_13 = arith.constant 0 : index
    %8 = vector.load %arg7[%c0_12, %c0_13] : memref<16x1xf32, #tpu.memory_space<vmem>>, vector<16x1xf32>
    %9 = vector.shape_cast %8 : vector<16x1xf32> to vector<1x16x1xf32>
    %c0_14 = arith.constant 0 : index
    %c0_15 = arith.constant 0 : index
    %10 = vector.load %arg8[%c0_14, %c0_15] : memref<16x16xbf16, #tpu.memory_space<vmem>>, vector<16x16xbf16>
    %c0_16 = arith.constant 0 : index
    %c0_17 = arith.constant 0 : index
    %11 = vector.load %arg9[%c0_16, %c0_17] : memref<9x256xf32, #tpu.memory_space<vmem>>, vector<9x256xf32>
    %12 = vector.extract_strided_slice %4 {offsets = [0, 0], sizes = [8, 1], strides = [1, 1]} : vector<8x9xf32> to vector<8x1xf32>
    %13 = vector.extract_strided_slice %11 {offsets = [0, 0], sizes = [1, 256], strides = [1, 1]} : vector<9x256xf32> to vector<1x256xf32>
    %14 = vector.broadcast %12 : vector<8x1xf32> to vector<8x256xf32>
    %15 = vector.broadcast %13 : vector<1x256xf32> to vector<8x256xf32>
    %16 = arith.mulf %14, %15 : vector<8x256xf32>
    %17 = vector.extract_strided_slice %4 {offsets = [0, 1], sizes = [8, 1], strides = [1, 1]} : vector<8x9xf32> to vector<8x1xf32>
    %18 = vector.extract_strided_slice %11 {offsets = [1, 0], sizes = [1, 256], strides = [1, 1]} : vector<9x256xf32> to vector<1x256xf32>
    %19 = vector.broadcast %17 : vector<8x1xf32> to vector<8x256xf32>
    %20 = vector.broadcast %18 : vector<1x256xf32> to vector<8x256xf32>
    %21 = arith.mulf %19, %20 : vector<8x256xf32>
    %22 = vector.extract_strided_slice %4 {offsets = [0, 2], sizes = [8, 1], strides = [1, 1]} : vector<8x9xf32> to vector<8x1xf32>
    %23 = vector.extract_strided_slice %11 {offsets = [2, 0], sizes = [1, 256], strides = [1, 1]} : vector<9x256xf32> to vector<1x256xf32>
    %24 = vector.broadcast %22 : vector<8x1xf32> to vector<8x256xf32>
    %25 = vector.broadcast %23 : vector<1x256xf32> to vector<8x256xf32>
    %26 = arith.mulf %24, %25 : vector<8x256xf32>
    %27 = vector.extract_strided_slice %4 {offsets = [0, 3], sizes = [8, 1], strides = [1, 1]} : vector<8x9xf32> to vector<8x1xf32>
    %28 = vector.extract_strided_slice %11 {offsets = [3, 0], sizes = [1, 256], strides = [1, 1]} : vector<9x256xf32> to vector<1x256xf32>
    %29 = vector.broadcast %27 : vector<8x1xf32> to vector<8x256xf32>
    %30 = vector.broadcast %28 : vector<1x256xf32> to vector<8x256xf32>
    %31 = arith.mulf %29, %30 : vector<8x256xf32>
    %32 = vector.extract_strided_slice %4 {offsets = [0, 4], sizes = [8, 1], strides = [1, 1]} : vector<8x9xf32> to vector<8x1xf32>
    %33 = vector.extract_strided_slice %11 {offsets = [4, 0], sizes = [1, 256], strides = [1, 1]} : vector<9x256xf32> to vector<1x256xf32>
    %34 = vector.broadcast %32 : vector<8x1xf32> to vector<8x256xf32>
    %35 = vector.broadcast %33 : vector<1x256xf32> to vector<8x256xf32>
    %36 = arith.mulf %34, %35 : vector<8x256xf32>
    %37 = vector.extract_strided_slice %4 {offsets = [0, 5], sizes = [8, 1], strides = [1, 1]} : vector<8x9xf32> to vector<8x1xf32>
    %38 = vector.extract_strided_slice %11 {offsets = [5, 0], sizes = [1, 256], strides = [1, 1]} : vector<9x256xf32> to vector<1x256xf32>
    %39 = vector.broadcast %37 : vector<8x1xf32> to vector<8x256xf32>
    %40 = vector.broadcast %38 : vector<1x256xf32> to vector<8x256xf32>
    %41 = arith.mulf %39, %40 : vector<8x256xf32>
    %42 = vector.extract_strided_slice %4 {offsets = [0, 6], sizes = [8, 1], strides = [1, 1]} : vector<8x9xf32> to vector<8x1xf32>
    %43 = vector.extract_strided_slice %11 {offsets = [6, 0], sizes = [1, 256], strides = [1, 1]} : vector<9x256xf32> to vector<1x256xf32>
    %44 = vector.broadcast %42 : vector<8x1xf32> to vector<8x256xf32>
    %45 = vector.broadcast %43 : vector<1x256xf32> to vector<8x256xf32>
    %46 = arith.mulf %44, %45 : vector<8x256xf32>
    %47 = vector.extract_strided_slice %4 {offsets = [0, 7], sizes = [8, 1], strides = [1, 1]} : vector<8x9xf32> to vector<8x1xf32>
    %48 = vector.extract_strided_slice %11 {offsets = [7, 0], sizes = [1, 256], strides = [1, 1]} : vector<9x256xf32> to vector<1x256xf32>
    %49 = vector.broadcast %47 : vector<8x1xf32> to vector<8x256xf32>
    %50 = vector.broadcast %48 : vector<1x256xf32> to vector<8x256xf32>
    %51 = arith.mulf %49, %50 : vector<8x256xf32>
    %52 = vector.extract_strided_slice %4 {offsets = [0, 8], sizes = [8, 1], strides = [1, 1]} : vector<8x9xf32> to vector<8x1xf32>
    %53 = vector.extract_strided_slice %11 {offsets = [8, 0], sizes = [1, 256], strides = [1, 1]} : vector<9x256xf32> to vector<1x256xf32>
    %54 = vector.broadcast %52 : vector<8x1xf32> to vector<8x256xf32>
    %55 = vector.broadcast %53 : vector<1x256xf32> to vector<8x256xf32>
    %56 = arith.mulf %54, %55 : vector<8x256xf32>
    "tpu.trace_start"() <{level = 10 : i32, message = "oc,bcl->bol"}> : () -> ()
    %cst = arith.constant dense<0.000000e+00> : vector<1x256x8xf32>
    %57 = tpu.matmul %0, %1, %cst {dimension_numbers = #tpu.dot_dimension_numbers<[1], [1], [0, 2], [0], [0, 0, 0, 2, 1, 0], [], []>} : vector<1x16x256xbf16>, vector<8x16xbf16>, vector<1x256x8xf32> -> vector<1x256x8xf32>
    %58 = tpu.transpose %57, [0, 2, 1] : vector<1x256x8xf32> -> vector<1x8x256xf32>
    "tpu.trace_stop"() : () -> ()
    %59 = vector.broadcast %3 : vector<1x8x1xf32> to vector<1x8x256xf32>
    %60 = arith.addf %58, %59 : vector<1x8x256xf32>
    %cst_18 = arith.constant 0.000000e+00 : f32
    %61 = vector.broadcast %cst_18 : f32 to vector<1x8x256xf32>
    %62 = arith.maximumf %60, %61 : vector<1x8x256xf32>
    %63 = vector.shape_cast %36 : vector<8x256xf32> to vector<1x8x256xf32>
    %64 = arith.mulf %62, %63 : vector<1x8x256xf32>
    %c17_i32 = arith.constant 17 : i32
    %65 = tpu.dynamic_rotate %62 by %c17_i32 dim 2 : vector<1x8x256xf32>, i32 -> vector<1x8x256xf32>
    %66 = vector.shape_cast %16 : vector<8x256xf32> to vector<1x8x256xf32>
    %67 = arith.mulf %65, %66 : vector<1x8x256xf32>
    %68 = arith.addf %64, %67 : vector<1x8x256xf32>
    %c16_i32 = arith.constant 16 : i32
    %69 = tpu.dynamic_rotate %62 by %c16_i32 dim 2 : vector<1x8x256xf32>, i32 -> vector<1x8x256xf32>
    %70 = vector.shape_cast %21 : vector<8x256xf32> to vector<1x8x256xf32>
    %71 = arith.mulf %69, %70 : vector<1x8x256xf32>
    %72 = arith.addf %68, %71 : vector<1x8x256xf32>
    %c15_i32 = arith.constant 15 : i32
    %73 = tpu.dynamic_rotate %62 by %c15_i32 dim 2 : vector<1x8x256xf32>, i32 -> vector<1x8x256xf32>
    %74 = vector.shape_cast %26 : vector<8x256xf32> to vector<1x8x256xf32>
    %75 = arith.mulf %73, %74 : vector<1x8x256xf32>
    %76 = arith.addf %72, %75 : vector<1x8x256xf32>
    %c1_i32 = arith.constant 1 : i32
    %77 = tpu.dynamic_rotate %62 by %c1_i32 dim 2 : vector<1x8x256xf32>, i32 -> vector<1x8x256xf32>
    %78 = vector.shape_cast %31 : vector<8x256xf32> to vector<1x8x256xf32>
    %79 = arith.mulf %77, %78 : vector<1x8x256xf32>
    %80 = arith.addf %76, %79 : vector<1x8x256xf32>
    %c255_i32 = arith.constant 255 : i32
    %81 = tpu.dynamic_rotate %62 by %c255_i32 dim 2 : vector<1x8x256xf32>, i32 -> vector<1x8x256xf32>
    %82 = vector.shape_cast %41 : vector<8x256xf32> to vector<1x8x256xf32>
    %83 = arith.mulf %81, %82 : vector<1x8x256xf32>
    %84 = arith.addf %80, %83 : vector<1x8x256xf32>
    %c241_i32 = arith.constant 241 : i32
    %85 = tpu.dynamic_rotate %62 by %c241_i32 dim 2 : vector<1x8x256xf32>, i32 -> vector<1x8x256xf32>
    %86 = vector.shape_cast %46 : vector<8x256xf32> to vector<1x8x256xf32>
    %87 = arith.mulf %85, %86 : vector<1x8x256xf32>
    %88 = arith.addf %84, %87 : vector<1x8x256xf32>
    %c240_i32 = arith.constant 240 : i32
    %89 = tpu.dynamic_rotate %62 by %c240_i32 dim 2 : vector<1x8x256xf32>, i32 -> vector<1x8x256xf32>
    %90 = vector.shape_cast %51 : vector<8x256xf32> to vector<1x8x256xf32>
    %91 = arith.mulf %89, %90 : vector<1x8x256xf32>
    %92 = arith.addf %88, %91 : vector<1x8x256xf32>
    %c239_i32 = arith.constant 239 : i32
    %93 = tpu.dynamic_rotate %62 by %c239_i32 dim 2 : vector<1x8x256xf32>, i32 -> vector<1x8x256xf32>
    %94 = vector.shape_cast %56 : vector<8x256xf32> to vector<1x8x256xf32>
    %95 = arith.mulf %93, %94 : vector<1x8x256xf32>
    %96 = arith.addf %92, %95 : vector<1x8x256xf32>
    %97 = vector.broadcast %6 : vector<1x8x1xf32> to vector<1x8x256xf32>
    %98 = arith.addf %96, %97 : vector<1x8x256xf32>
    %99 = arith.truncf %98 : vector<1x8x256xf32> to vector<1x8x256xbf16>
    "tpu.trace_start"() <{level = 10 : i32, message = "oc,bcl->bol"}> : () -> ()
    %cst_19 = arith.constant dense<0.000000e+00> : vector<1x256x16xf32>
    %100 = tpu.matmul %99, %7, %cst_19 {dimension_numbers = #tpu.dot_dimension_numbers<[1], [1], [0, 2], [0], [0, 0, 0, 2, 1, 0], [], []>} : vector<1x8x256xbf16>, vector<16x8xbf16>, vector<1x256x16xf32> -> vector<1x256x16xf32>
    %101 = tpu.transpose %100, [0, 2, 1] : vector<1x256x16xf32> -> vector<1x16x256xf32>
    "tpu.trace_stop"() : () -> ()
    %102 = vector.broadcast %9 : vector<1x16x1xf32> to vector<1x16x256xf32>
    %103 = arith.addf %101, %102 : vector<1x16x256xf32>
    %cst_20 = arith.constant 0.000000e+00 : f32
    %104 = vector.broadcast %cst_20 : f32 to vector<1x16x256xf32>
    %105 = arith.maximumf %103, %104 : vector<1x16x256xf32>
    "tpu.trace_start"() <{level = 10 : i32, message = "oc,bcl->bol"}> : () -> ()
    %cst_21 = arith.constant dense<0.000000e+00> : vector<1x256x16xf32>
    %106 = tpu.matmul %0, %10, %cst_21 {dimension_numbers = #tpu.dot_dimension_numbers<[1], [1], [0, 2], [0], [0, 0, 0, 2, 1, 0], [], []>} : vector<1x16x256xbf16>, vector<16x16xbf16>, vector<1x256x16xf32> -> vector<1x256x16xf32>
    %107 = tpu.transpose %106, [0, 2, 1] : vector<1x256x16xf32> -> vector<1x16x256xf32>
    "tpu.trace_stop"() : () -> ()
    %108 = arith.addf %105, %107 : vector<1x16x256xf32>
    %109 = arith.truncf %108 : vector<1x16x256xf32> to vector<1x16x256xbf16>
    %c0_22 = arith.constant 0 : index
    %c0_23 = arith.constant 0 : index
    %c0_24 = arith.constant 0 : index
    %110 = vector.load %arg10[%c0_22, %c0_23, %c0_24] : memref<1x16x256xbf16, #tpu.memory_space<vmem>>, vector<1x16x256xbf16>
    tpu.vector_store %arg10[%c0_22, %c0_23, %c0_24], %109 {strides = array<i32>} : memref<1x16x256xbf16, #tpu.memory_space<vmem>>, vector<1x16x256xbf16>,
    return
  }
  func.func @transform_0(%arg0: i32) -> (i32, i32, i32) {
    %c0_i32 = arith.constant 0 : i32
    %c0_i32_0 = arith.constant 0 : i32
    %c0_i32_1 = arith.constant 0 : i32
    return %arg0, %c0_i32, %c0_i32_0 : i32, i32, i32
  }
  func.func @transform_1(%arg0: i32) -> (i32, i32) {
    %c0_i32 = arith.constant 0 : i32
    %c0_i32_0 = arith.constant 0 : i32
    %c0_i32_1 = arith.constant 0 : i32
    return %c0_i32, %c0_i32_0 : i32, i32
  }
  func.func @transform_2(%arg0: i32) -> (i32, i32) {
    %c0_i32 = arith.constant 0 : i32
    %c0_i32_0 = arith.constant 0 : i32
    %c0_i32_1 = arith.constant 0 : i32
    return %c0_i32, %c0_i32_0 : i32, i32
  }
  func.func @transform_3(%arg0: i32) -> (i32, i32) {
    %c0_i32 = arith.constant 0 : i32
    %c0_i32_0 = arith.constant 0 : i32
    %c0_i32_1 = arith.constant 0 : i32
    return %c0_i32, %c0_i32_0 : i32, i32
  }
  func.func @transform_4(%arg0: i32) -> (i32, i32) {
    %c0_i32 = arith.constant 0 : i32
    %c0_i32_0 = arith.constant 0 : i32
    %c0_i32_1 = arith.constant 0 : i32
    return %c0_i32, %c0_i32_0 : i32, i32
  }
  func.func @transform_5(%arg0: i32) -> (i32, i32) {
    %c0_i32 = arith.constant 0 : i32
    %c0_i32_0 = arith.constant 0 : i32
    %c0_i32_1 = arith.constant 0 : i32
    return %c0_i32, %c0_i32_0 : i32, i32
  }
  func.func @transform_6(%arg0: i32) -> (i32, i32) {
    %c0_i32 = arith.constant 0 : i32
    %c0_i32_0 = arith.constant 0 : i32
    %c0_i32_1 = arith.constant 0 : i32
    return %c0_i32, %c0_i32_0 : i32, i32
  }
  func.func @transform_7(%arg0: i32) -> (i32, i32) {
    %c0_i32 = arith.constant 0 : i32
    %c0_i32_0 = arith.constant 0 : i32
    %c0_i32_1 = arith.constant 0 : i32
    return %c0_i32, %c0_i32_0 : i32, i32
  }
  func.func @transform_8(%arg0: i32) -> (i32, i32) {
    %c0_i32 = arith.constant 0 : i32
    %c0_i32_0 = arith.constant 0 : i32
    %c0_i32_1 = arith.constant 0 : i32
    return %c0_i32, %c0_i32_0 : i32, i32
  }
  func.func @transform_9(%arg0: i32) -> (i32, i32, i32) {
    %c0_i32 = arith.constant 0 : i32
    %c0_i32_0 = arith.constant 0 : i32
    %c0_i32_1 = arith.constant 0 : i32
    return %arg0, %c0_i32, %c0_i32_0 : i32, i32, i32
  }
}

</mosaic_0001>

<bundles_post_ra>
// kernel: tpu_custom_call.1
= control target key start
LH: loop header
LB: loop body
LE: loop exit
PB: predicated region body
PF: predicated region fallthrough
CT: control target
= control target key end

     0   :  { %14 = vsyncpa [#allocation3], 0  ;;  %s2583_s0 = inlined_call_operand.vmem [shape: bf16[2,16,256], index: 0, kind: input, shape index: {}]   ;;  %s2584_s1 = inlined_call_operand.hbm [shape: bf16[8,16], index: 1, kind: input, shape index: {}]   ;;  %s2585_s2 = inlined_call_operand.vmem [shape: f32[8,1], index: 2, kind: input, shape index: {}]   ;;  %s2586_s3 = inlined_call_operand.hbm [shape: f32[8,9], index: 3, kind: input, shape index: {}]   ;;  %s2587_s4 = inlined_call_operand.vmem [shape: f32[8,1], index: 4, kind: input, shape index: {}]   ;;  %s2588_s5 = inlined_call_operand.vmem [shape: bf16[16,8], index: 5, kind: input, shape index: {}]   ;;  %s2589_s6 = inlined_call_operand.vmem [shape: f32[16,1], index: 6, kind: input, shape index: {}]   ;;  %s2590_s7 = inlined_call_operand.vmem [shape: bf16[16,16], index: 7, kind: input, shape index: {}]   ;;  %s2591_s8 = inlined_call_operand.vmem [shape: f32[9,256], index: 8, kind: input, shape index: {}]   ;;  %s2592_s9 = inlined_call_operand.hbm [shape: bf16[2,16,256], index: 9, kind: output, shape index: {}]  }
   0x1   :  { %15 = vsyncpa [#allocation6], 0 }
   0x2   :  { %16 = vsyncpa [#allocation4], 0 }
   0x3   :  { %18 = vsyncpa [#allocation4 + $0x1], 0  ;;  %s2141_s30 = smov 0   ;;  %s2143_s10 = smov 0  }
   0x4   :  { %s2145_s11 = smov 0   ;;  %s2147_s12 = smov 0  }
   0x5 LB: > { %s2162_s13 = sadd.s32 4294967295, %s2067_s12   ;;  %s1611_s14 = sadd.s32 4294967294, %s2067_s12   ;;  %s2067_s12 = sphi %s2147_s12, %s2620_s12   ;;  %s2063_s11 = sphi %s2145_s11, %s2619_s11   ;;  %s2059_s10 = sphi %s2143_s10, %s2618_s10   ;;  %s2055_s30 = sphi %s2141_s30, %s2617_s30  }
   0x6   : > { %s2166_s15 = sadd.s32 1, %s2067_s12   ;;  %s225_s16 = sadd.s32 1, %s2063_s11 }
   0x7   : > { %s222_s17 = ssub.s32 %s2067_s12, %s2166_s15  ;;  %p235_p0 = scmp.ne.s32.totalorder %s2063_s11, %s2059_s10 }
   0x8   : > { %p223_p1 = scmp.eq.s32.totalorder %s222_s17, 0  ;;  %p236_p2 = scmp.eq.s32.totalorder %s2162_s13, 1 }
   0x9   : > { %p241_p3 = scmp.ne.s32.totalorder %s2059_s10, %s2055_s30  ;;  %p242_p4 = scmp.eq.s32.totalorder %s1611_s14, 1 }
   0xa   : > { %s2177_s18 = scalar_select %p223_p1, %s2063_s11, %s225_s16  }
   0xb   : > { %p2179_p5 = por %p236_p2, %p235_p0  ;;  %p2183_p6 = por %p242_p4, %p241_p3 }
   0xc   : > { %2597 = sst [smem:[#allocation11_spill]] %s2177_s18  ;;  %p1612_p7 = scmp.ge.s32.totalorder %s2067_s12, 1 }
   0xd   : > { %s2598_s19 = scalar_select %p2179_p5, 1, 0 }
   0xe   : > { %s2599_s20 = scalar_select %p2183_p6, 1, 0 }
   0xf   : > { %p249_p8 = scmp.lt.s32.totalorder %s2067_s12, 3  ;;  %p2593_p9 = scmp.eq.s32.totalorder %s2162_s13, 0 }
  0x10   : > { %s2069_s22 = smov [#allocation2]   ;;  %s2070_s24 = smov [#allocation5]  }
  0x11   : > { %p2190_p10 = pnand %p1612_p7, %p249_p8  ;;  %s262_s23 = sshll.u32 %s2069_s22, 4  ;;  %s263_s23 = int_to_ptr.vmem [resolvable:$true] %s262_s23 }
  0x12   : > { %s276_s25 = sshll.u32 %s2070_s24, 4  ;;  %s1941_s29 = scalar_lea.hbm %s2584_s1, 64  ;;  %s2202_s25 = int_to_ptr.vmem [resolvable:$true] %s276_s25 }
  0x13   : > { %s2600_s21 = scalar_select %p2190_p10, 1, 0 }
  0x14   : > { %p1856_p11 = pneg %p2190_p10  ;;  %p1942_p13 = scmp.ne.s32.totalorder %s2584_s1, %s1941_s29 }
  0x15   : > { %p1948_p3 = scmp.lt.u32.totalorder %s1941_s29, %s2584_s1 }
  0x16   : > { %p2198_p12 = pnand %p2593_p9, %p1856_p11 }
  0x18   : > { %p1943_p0 = pneg %p2198_p12 }
  0x1a   : > { %p1944_p1 = pnand %p1943_p0, %p1942_p13 }
  0x1c   : > { %p1945_p2 = pneg %p1944_p1 }
  0x1e   : > { %p1950_p4 = pnand %p1948_p3, %p1945_p2 }
  0x20   : > { %1953 = shalt.err (!%p1950_p4)
}
  0x21   : > { %s1954_s24 = scalar_lea.vmem %s263_s23, 64  ;;  %p1962_p9 = scmp.lt.s32.totalorder %s263_s23, %s263_s23 }
  0x22   : > { %p1955_p7 = scmp.ne.s32.totalorder %s263_s23, %s1954_s24  ;;  %p1963_p6 = scmp.lt.s32.totalorder %s1954_s24, %s1954_s24 }
  0x24   : > { %p1957_p8 = pnand %p1955_p7, %p1943_p0  ;;  %p1964_p5 = por %p1963_p6, %p1962_p9 }
  0x26   : > { %p1958_p11 = pneg %p1957_p8 }
  0x28   : > { %p1965_p10 = pnand %p1964_p5, %p1958_p11 }
  0x2a   : > { %1968 = shalt.err (!%p1965_p10)
}
  0x2b   : > { %1859 = dma.hbm_to_vmem [thread:$0]  (!%p2198_p12), %s2584_s1, 64, %s263_s23, [#allocation3]  }
  0x2c   : > { %s1969_s16 = scalar_lea.hbm %s2586_s3, 128 }
  0x2d   : > { %p1970_p13 = scmp.ne.s32.totalorder %s2586_s3, %s1969_s16  ;;  %p1976_p9 = scmp.lt.u32.totalorder %s1969_s16, %s2586_s3 }
  0x2f   : > { %p1972_p6 = pnand %p1970_p13, %p1943_p0 }
  0x31   : > { %p1973_p5 = pneg %p1972_p6 }
  0x33   : > { %p1978_p10 = pnand %p1976_p9, %p1973_p5 }
  0x35   : > { %1981 = shalt.err (!%p1978_p10)
}
  0x36   : > { %s1982_s23 = scalar_lea.vmem %s2202_s25, 128  ;;  %p1990_p4 = scmp.lt.s32.totalorder %s2202_s25, %s2202_s25 }
  0x37   : > { %p1983_p1 = scmp.ne.s32.totalorder %s2202_s25, %s1982_s23  ;;  %p1991_p7 = scmp.lt.s32.totalorder %s1982_s23, %s1982_s23 }
  0x39   : > { %p1985_p2 = pnand %p1983_p1, %p1943_p0  ;;  %p1992_p8 = por %p1991_p7, %p1990_p4 }
  0x3b   : > { %p1986_p3 = pneg %p1985_p2 }
  0x3d   : > { %p1993_p11 = pnand %p1992_p8, %p1986_p3 }
  0x3f   : > { %1996 = shalt.err (!%p1993_p11)
}
  0x40   : > { %1862 = dma.hbm_to_vmem [thread:$0]  (!%p2198_p12), %s2586_s3, 128, %s2202_s25, [#allocation6]  }
  0x41   : > { %p2602_p13 = scmp.ne.s32.totalorder %s2600_s21, 0 }
  0x43   : > { %312 = sbr.rel (%p2602_p13) target bundleno = 1301 (0x515), region = 56 }
  0x4a   : > { %p2603_p6 = scmp.eq.s32.totalorder %s2162_s13, 0 }
  0x4c   : > { %2042 = dma.done.wait (%p2603_p6), [#allocation3], 64   ;;  %p2604_p0 = pmov %p2603_p6 }
  0x4e   : > { %2044 = vsyncadd (%p2604_p0), [#allocation3], 4294967232  ;;  %p2605_p5 = pmov %p2604_p0 }
  0x4f   : > { %p2606_p9 = pmov %p2604_p0 }
  0x50   : > { %2046 = dma.done.wait (%p2605_p5), [#allocation6], 128  }
  0x51   : > { %2048 = vsyncadd (%p2606_p9), [#allocation6], 4294967168  ;;  %p352_p10 = scmp.lt.s32.totalorder %s2162_s13, 1  ;;  %vm543_vm0 = vcmask 130048   ;;  %v360_v1 = vld [vmem:[#allocation2] sm:$0xf] }
  0x52   : > { %1842 = vmatprep.subr.msk.bf16.mxu0 %vm543_vm0, %v360_v1  ;;  %v593_v2 = vsel %vm543_vm0, %v360_v1, 0  ;;  %1843 = vmatprep.subr.msk.bf16.mxu1 %vm543_vm0, %v360_v1  ;;  %v1939_v3 = vld [vmem:[%s2590_s7] sm:$0xff]   ;;  %v2596_v6 = vmov 0   ;;  %v2072_v8 = vmov 4   ;;  %v2073_v9 = vmov 1   ;;  %s2080_s18 = smov 17  }
  0x53   : > { %s353_s26 = scalar_select %p352_p10, %s2162_s13, 1  ;;  %1739 = vmatpush3.bf16.xpose.msra.mxu0 %v593_v2  ;;  %1841 = vmatpush3.bf16.xpose.msra.mxu1 %v593_v2  ;;  %v361_v5 = vld [vmem:[%s2585_s2] sm:$0xff]  ;;  %v2074_v10 = vmov 2   ;;  %v2075_v11 = vmov 3   ;;  %v2076_v12 = vmov 5   ;;  %v2077_v13 = vmov 6  }
  0x54   : > { %1845 = vmatprep.subr.msk.bf16.mxu0 %vm543_vm0, %v1939_v3  ;;  %1925 = vset.pattern.permute.xlu1 %v2596_v6  ;;  %v2277_v7 = vld [vmem:[#allocation5] sm:$0xff]  ;;  %v2078_v15 = vmov 7   ;;  %v1268_v16 = vsel %vm543_vm0, %v1939_v3, 0  ;;  %v2079_v32 = vmov 8   ;;  %s2082_s28 = smov 15   ;;  %s2083_s21 = smov 127  }
  0x55   : > { %s1683_s25 = sshll.u32 %s353_s26, 4  ;;  %822 = vperm.xlu1 %1925, %v361_v5   ;;  %s2085_s14 = smov 1   ;;  %vm967_vm1 = vcmask 64512  }
  0x56   : > { %s356_s29 = scalar_lea.vmem %s2583_s0, %s1683_s25  ;;  %s2081_s25 = smov 16  }
  0x57   : > { %v1936_v0 = vld [vmem:[%s356_s29] ss:$8 sps:$4 sm:$0xff]   ;;  %v1938_v4 = vld [vmem:[%s356_s29 + $0x4] ss:$8 sps:$4 sm:$0xff]   ;;  %s2084_s29 = smov 113   ;;  %s2086_s16 = smov 112  }
  0x58   : > { %511 = vxpose.xlu0.c.b16.start.end [1/1] (short) %v1936_v0, 128  ;;  %s2087_s24 = smov 111   ;;  %s349_s17 = sand.u32 1, %s2059_s10  }
  0x59   : > { %376 = vperm.xlu1 %1925, %v2277_v7   ;;  %s1619_s22 = sshll.u32 %s349_s17, 4  ;;  %p2614_p1 = scmp.ne.s32.totalorder %s2598_s19, 0 }
  0x5d   : > { %1927 = vset.pattern.permute.xlu1 %v2073_v9 }
  0x5e   : > { %390 = vperm.xlu1 %1927, %v2277_v7  }
  0x62   : > { %1928 = vset.pattern.permute.xlu1 %v2074_v10 }
  0x63   : > { %404 = vperm.xlu1 %1928, %v2277_v7  }
  0x67   : > { %1929 = vset.pattern.permute.xlu1 %v2075_v11 }
  0x68   : > { %418 = vperm.xlu1 %1929, %v2277_v7  }
  0x6c   : > { %1930 = vset.pattern.permute.xlu1 %v2076_v12 }
  0x6d   : > { %446 = vperm.xlu1 %1930, %v2277_v7  }
  0x71   : > { %1931 = vset.pattern.permute.xlu1 %v2077_v13 }
  0x72   : > { %460 = vperm.xlu1 %1931, %v2277_v7  }
  0x75   : > { %527 = vxpose.xlu0.c.b16.start.end [1/1] (short) %v1938_v4, 128 }
  0x76   : > { %1932 = vset.pattern.permute.xlu1 %v2078_v15 }
  0x77   : > { %474 = vperm.xlu1 %1932, %v2277_v7  }
  0x7e   : > { %1926 = vset.pattern.permute.xlu0 %v2072_v8 }
  0x9a   : > { %432 = vperm.xlu0 %1926, %v2277_v7  }
  0x9e   : > { %1933 = vset.pattern.permute.xlu0 %v2079_v32 }
  0x9f   : > { %488 = vperm.xlu0 %1933, %v2277_v7  }
  0xbe   : > { %v519_v14 = vpop.trf.xlu0 }
  0xbf   : > { %1740 = vmatprep.mubr.msk.bf16.mxu0 %vm543_vm0, %v519_v14 }
  0xc2   : > { %v520_v17 = vpop.trf.xlu0 }
  0xc3   : > { %1741 = vmatmul.mubr.msk.bf16.vlgmr.msra.gmra.mrb[0].mxu0 %vm543_vm0, %v520_v17 }
  0xc4   : > { %1807 = vmatpush3.bf16.xpose.msra.mxu0 %v1268_v16 }
  0xc6   : > { %v521_v18 = vpop.trf.xlu0 }
  0xc7   : > { %1744 = vmatprep.mubr.msk.bf16.mxu0 %vm543_vm0, %v521_v18 }
  0xca   : > { %v522_v19 = vpop.trf.xlu0 }
  0xcb   : > { %1745 = vmatmul.mubr.msk.bf16.gmra.mrb[4].mxu0 %vm543_vm0, %v522_v19 }
  0xce   : > { %v523_v20 = vpop.trf.xlu0 }
  0xcf   : > { %1748 = vmatprep.mubr.msk.bf16.mxu0 %vm543_vm0, %v523_v20 }
  0xd2   : > { %v524_v21 = vpop.trf.xlu0 }
  0xd3   : > { %1749 = vmatmul.mubr.msk.bf16.gmra.mrb[8].mxu0 %vm543_vm0, %v524_v21 }
  0xd6   : > { %v525_v22 = vpop.trf.xlu0 }
  0xd7   : > { %1752 = vmatprep.mubr.msk.bf16.mxu0 %vm543_vm0, %v525_v22 }
  0xda   : > { %v526_v23 = vpop.trf.xlu0 }
  0xdb   : > { %1753 = vmatmul.mubr.msk.bf16.gmra.mrb[12].mxu0 %vm543_vm0, %v526_v23 }
  0xdc   : > { %1808 = vmatprep.mubr.msk.bf16.mxu0 %vm543_vm0, %v519_v14 }
  0xde   : > { %v535_v24 = vpop.trf.xlu0 }
  0xdf   : > { %1756 = vmatprep.mubr.msk.bf16.mxu1 %vm543_vm0, %v535_v24 }
  0xe2   : > { %v536_v25 = vpop.trf.xlu0 }
  0xe3   : > { %1757 = vmatmul.mubr.msk.bf16.vlgmr.msra.gmra.mrb[0].mxu1 %vm543_vm0, %v536_v25  ;;  %1809 = vmatmul.mubr.msk.bf16.vlgmr.msra.gmra.mrb[16].mxu0 %vm543_vm0, %v520_v17 }
  0xe4   : > { %1812 = vmatprep.mubr.msk.bf16.mxu0 %vm543_vm0, %v521_v18 }
  0xe6   : > { %v537_v26 = vpop.trf.xlu0 }
  0xe7   : > { %1760 = vmatprep.mubr.msk.bf16.mxu1 %vm543_vm0, %v537_v26 }
  0xea   : > { %v538_v27 = vpop.trf.xlu0 }
  0xeb   : > { %1813 = vmatmul.mubr.msk.bf16.gmra.mrb[20].mxu0 %vm543_vm0, %v522_v19  ;;  %1761 = vmatmul.mubr.msk.bf16.gmra.mrb[4].mxu1 %vm543_vm0, %v538_v27 }
  0xec   : > { %1816 = vmatprep.mubr.msk.bf16.mxu0 %vm543_vm0, %v523_v20 }
  0xee   : > { %v539_v28 = vpop.trf.xlu0 }
  0xef   : > { %1764 = vmatprep.mubr.msk.bf16.mxu1 %vm543_vm0, %v539_v28 }
  0xf2   : > { %v540_v29 = vpop.trf.xlu0 }
  0xf3   : > { %1817 = vmatmul.mubr.msk.bf16.gmra.mrb[24].mxu0 %vm543_vm0, %v524_v21  ;;  %1765 = vmatmul.mubr.msk.bf16.gmra.mrb[8].mxu1 %vm543_vm0, %v540_v29 }
  0xf4   : > { %1820 = vmatprep.mubr.msk.bf16.mxu0 %vm543_vm0, %v525_v22 }
  0xf6   : > { %v541_v30 = vpop.trf.xlu0 }
  0xf7   : > { %1768 = vmatprep.mubr.msk.bf16.mxu1 %vm543_vm0, %v541_v30 }
  0xfa   : > { %v542_v31 = vpop.trf.xlu0 }
  0xfb   : > { %1821 = vmatmul.mubr.msk.bf16.gmra.mrb[28].mxu0 %vm543_vm0, %v526_v23  ;;  %1769 = vmatmul.mubr.msk.bf16.gmra.mrb[12].mxu1 %vm543_vm0, %v542_v31 }
  0xfc   : > { %1824 = vmatprep.mubr.msk.bf16.mxu0 %vm543_vm0, %v535_v24 }
 0x103   : > { %1825 = vmatmul.mubr.msk.bf16.gmra.mrb[32].mxu0 %vm543_vm0, %v536_v25 }
 0x104   : > { %1828 = vmatprep.mubr.msk.bf16.mxu0 %vm543_vm0, %v537_v26 }
 0x10b   : > { %1829 = vmatmul.mubr.msk.bf16.gmra.mrb[36].mxu0 %vm543_vm0, %v538_v27 }
 0x10c   : > { %1832 = vmatprep.mubr.msk.bf16.mxu0 %vm543_vm0, %v539_v28 }
 0x113   : > { %1833 = vmatmul.mubr.msk.bf16.gmra.mrb[40].mxu0 %vm543_vm0, %v540_v29 }
 0x114   : > { %1836 = vmatprep.mubr.msk.bf16.mxu0 %vm543_vm0, %v541_v30  ;;  %v823_v30 = vpop.permute.xlu1 %822 }
 0x11b   : > { %1837 = vmatmul.mubr.msk.bf16.gmra.mrb[44].mxu0 %vm543_vm0, %v542_v31 }
 0x196   : > { %v1742_v33 = vpop.f32.mrb[0].mxu0 }
 0x197   : > { %v629_v34 = vpop.f32.mrb[1].mxu0 }
 0x198   : > { %756 = vxpose.xlu1.b32.start [1/16] (narrow) %v629_v34, 8  ;;  %v1743_v35 = vpop.f32.mrb[2].mxu0 }
 0x199   : > { %v632_v36 = vpop.f32.mrb[3].mxu0 }
 0x19c   : > { %757 = vxpose.xlu1.b32.cont [2/16] (narrow) %v632_v36, 8 }
 0x19e   : > { %v1746_v37 = vpop.f32.mrb[4].mxu0 }
 0x19f   : > { %v645_v38 = vpop.f32.mrb[5].mxu0 }
 0x1a0   : > { %758 = vxpose.xlu1.b32.cont [3/16] (narrow) %v1742_v33, 8  ;;  %v1747_v39 = vpop.f32.mrb[6].mxu0 }
 0x1a1   : > { %v648_v40 = vpop.f32.mrb[7].mxu0 }
 0x1a4   : > { %759 = vxpose.xlu1.b32.cont [4/16] (narrow) %v1743_v35, 8  ;;  %v2385_v35 = vpop.permute.xlu1 %376 }
 0x1a6   : > { %v1750_v41 = vpop.f32.mrb[8].mxu0 }
 0x1a7   : > { %v661_v42 = vpop.f32.mrb[9].mxu0 }
 0x1a8   : > { %760 = vxpose.xlu1.b32.cont [5/16] (narrow) %v645_v38, 8  ;;  %v1751_v43 = vpop.f32.mrb[10].mxu0  ;;  %v2387_v36 = vpop.permute.xlu1 %390 }
 0x1a9   : > { %v664_v44 = vpop.f32.mrb[11].mxu0 }
 0x1ac   : > { %761 = vxpose.xlu1.b32.cont [6/16] (narrow) %v648_v40, 8  ;;  %v379_v40 = vlaneseq }
 0x1ae   : > { %v1754_v45 = vpop.f32.mrb[12].mxu0 }
 0x1af   : > { %v677_v46 = vpop.f32.mrb[13].mxu0 }
 0x1b0   : > { %762 = vxpose.xlu1.b32.cont [7/16] (narrow) %v1746_v37, 8  ;;  %v1755_v47 = vpop.f32.mrb[14].mxu0  ;;  %v2389_v37 = vpop.permute.xlu1 %404 }
 0x1b1   : > { %v680_v48 = vpop.f32.mrb[15].mxu0 }
 0x1b4   : > { %763 = vxpose.xlu1.b32.cont [8/16] (narrow) %v1747_v39, 8  ;;  %v2391_v38 = vpop.permute.xlu1 %418 }
 0x1b6   : > { %v1758_v49 = vpop.f32.mrb[0].mxu1  ;;  %v2321_v50 = vpop.f32.mrb[16].mxu0 }
 0x1b7   : > { %v693_v51 = vpop.f32.mrb[1].mxu1  ;;  %v2323_v52 = vpop.f32.mrb[17].mxu0 }
 0x1b8   : > { %764 = vxpose.xlu1.b32.cont [9/16] (narrow) %v661_v42, 8  ;;  %v2325_v53 = vpop.f32.mrb[18].mxu0  ;;  %788 = vxpose.xlu0.b32.start [1/16] (narrow) %v693_v51, 8  ;;  %v1759_v54 = vpop.f32.mrb[2].mxu1  ;;  %v2397_v42 = vshrl.u32 %v379_v40, 7 }
 0x1b9   : > { %v696_v55 = vpop.f32.mrb[3].mxu1  ;;  %v2327_v56 = vpop.f32.mrb[19].mxu0 }
 0x1ba   : > { %v2393_v39 = vpop.permute.xlu1 %446 }
 0x1bc   : > { %765 = vxpose.xlu1.b32.cont [10/16] (narrow) %v664_v44, 8  ;;  %789 = vxpose.xlu0.b32.cont [2/16] (narrow) %v696_v55, 8 }
 0x1be   : > { %v2329_v57 = vpop.f32.mrb[20].mxu0  ;;  %v1762_v58 = vpop.f32.mrb[4].mxu1 }
 0x1bf   : > { %v2331_v59 = vpop.f32.mrb[21].mxu0  ;;  %v709_v60 = vpop.f32.mrb[5].mxu1 }
 0x1c0   : > { %766 = vxpose.xlu1.b32.cont [11/16] (narrow) %v1750_v41, 8  ;;  %v2333_v61 = vpop.f32.mrb[22].mxu0  ;;  %790 = vxpose.xlu0.b32.cont [3/16] (narrow) %v1758_v49, 8  ;;  %v1763_v62 = vpop.f32.mrb[6].mxu1 }
 0x1c1   : > { %v2335_v63 = vpop.f32.mrb[23].mxu0  ;;  %v712_v0 = vpop.f32.mrb[7].mxu1 }
 0x1c2   : > { %v2395_v41 = vpop.permute.xlu1 %460 }
 0x1c4   : > { %767 = vxpose.xlu1.b32.cont [12/16] (narrow) %v1751_v43, 8  ;;  %791 = vxpose.xlu0.b32.cont [4/16] (narrow) %v1759_v54, 8  ;;  %v437_v43 = vsub.s32 4, %v2397_v42 }
 0x1c6   : > { %v2337_v1 = vpop.f32.mrb[24].mxu0  ;;  %v1766_v2 = vpop.f32.mrb[8].mxu1 }
 0x1c7   : > { %v2339_v3 = vpop.f32.mrb[25].mxu0  ;;  %v725_v4 = vpop.f32.mrb[9].mxu1 }
 0x1c8   : > { %768 = vxpose.xlu1.b32.cont [13/16] (narrow) %v677_v46, 8  ;;  %v2341_v5 = vpop.f32.mrb[26].mxu0  ;;  %792 = vxpose.xlu0.b32.cont [5/16] (narrow) %v709_v60, 8  ;;  %v1767_v7 = vpop.f32.mrb[10].mxu1  ;;  %v2414_v60 = vld [vmem:[%s2591_s8 + $0x8] sm:$0xff] }
 0x1c9   : > { %v2343_v8 = vpop.f32.mrb[27].mxu0  ;;  %v728_v9 = vpop.f32.mrb[11].mxu1 }
 0x1ca   : > { %v2400_v44 = vpop.permute.xlu1 %474 }
 0x1cc   : > { %769 = vxpose.xlu1.b32.cont [14/16] (narrow) %v680_v48, 8  ;;  %793 = vxpose.xlu0.b32.cont [6/16] (narrow) %v712_v0, 8 }
 0x1ce   : > { %v2345_v10 = vpop.f32.mrb[28].mxu0  ;;  %v1770_v11 = vpop.f32.mrb[12].mxu1 }
 0x1cf   : > { %v2347_v12 = vpop.f32.mrb[29].mxu0  ;;  %v741_v13 = vpop.f32.mrb[13].mxu1 }
 0x1d0   : > { %770 = vxpose.xlu1.b32.cont [15/16] (narrow) %v1754_v45, 8  ;;  %v2349_v14 = vpop.f32.mrb[30].mxu0  ;;  %794 = vxpose.xlu0.b32.cont [7/16] (narrow) %v1762_v58, 8  ;;  %v1771_v15 = vpop.f32.mrb[14].mxu1  ;;  %v2405_v45 = vld [vmem:[%s2591_s8] sm:$0xff] }
 0x1d1   : > { %v2351_v16 = vpop.f32.mrb[31].mxu0  ;;  %v744_v17 = vpop.f32.mrb[15].mxu1  ;;  %v438_v46 = vrot.slane %v2405_v45, %v437_v43 }
 0x1d4   : > { %771 = vxpose.xlu1.b32.end [16/16] (narrow) %v1755_v47, 8  ;;  %795 = vxpose.xlu0.b32.cont [8/16] (narrow) %v1763_v62, 8  ;;  %v433_v47 = vpop.permute.xlu0 %432  ;;  %v442_v62 = vrot.slane %v2414_v60, %v437_v43  ;;  %v395_v43 = vsub.s32 1, %v2397_v42 }
 0x1d5   : > { %v443_v51 = vmul.f32 %v438_v46, %v433_v47 }
 0x1d6   : > { %v2353_v18 = vpop.f32.mrb[32].mxu0 }
 0x1d7   : > { %v2355_v19 = vpop.f32.mrb[33].mxu0 }
 0x1d8   : > { %v2357_v20 = vpop.f32.mrb[34].mxu0  ;;  %796 = vxpose.xlu0.b32.cont [9/16] (narrow) %v725_v4, 8  ;;  %v2409_v58 = vpop.permute.xlu0 %488  ;;  %v444_v4 = vmul.f32 %v442_v62, %v433_v47 }
 0x1d9   : > { %v2359_v21 = vpop.f32.mrb[35].mxu0 }
 0x1dc   : > { %797 = vxpose.xlu0.b32.cont [10/16] (narrow) %v728_v9, 8 }
 0x1de   : > { %v2361_v22 = vpop.f32.mrb[36].mxu0 }
 0x1df   : > { %v2363_v23 = vpop.f32.mrb[37].mxu0 }
 0x1e0   : > { %v2365_v24 = vpop.f32.mrb[38].mxu0  ;;  %798 = vxpose.xlu0.b32.cont [11/16] (narrow) %v1766_v2, 8 }
 0x1e1   : > { %v2367_v25 = vpop.f32.mrb[39].mxu0 }
 0x1e4   : > { %799 = vxpose.xlu0.b32.cont [12/16] (narrow) %v1767_v7, 8 }
 0x1e6   : > { %v2369_v26 = vpop.f32.mrb[40].mxu0 }
 0x1e7   : > { %v2371_v27 = vpop.f32.mrb[41].mxu0 }
 0x1e8   : > { %v2373_v28 = vpop.f32.mrb[42].mxu0  ;;  %800 = vxpose.xlu0.b32.cont [13/16] (narrow) %v741_v13, 8  ;;  %v1940_v13 = vld [vmem:[%s2588_s5] sm:$0xff]  }
 0x1e9   : > { %v2375_v29 = vpop.f32.mrb[43].mxu0  ;;  %1844 = vmatprep.subr.msk.bf16.mxu1 %vm967_vm1, %v1940_v13 }
 0x1ec   : > { %801 = vxpose.xlu0.b32.cont [14/16] (narrow) %v744_v17, 8  ;;  %v381_v17 = vsub.s32 0, %v2397_v42 }
 0x1ee   : > { %v2377_v31 = vpop.f32.mrb[44].mxu0  ;;  %v382_v46 = vrot.slane %v2405_v45, %v381_v17  ;;  %v386_v47 = vrot.slane %v2414_v60, %v381_v17 }
 0x1ef   : > { %2607 = vst [vmem:[#allocation12_spill] sm:$0xff] %v2377_v31  ;;  %v2379_v32 = vpop.f32.mrb[45].mxu0 }
 0x1f0   : > { %v2381_v33 = vpop.f32.mrb[46].mxu0  ;;  %802 = vxpose.xlu0.b32.cont [15/16] (narrow) %v1770_v11, 8  ;;  %v363_v11 = vld [vmem:[%s2587_s4] sm:$0xff]  ;;  %v388_v62 = vmul.f32 %v386_v47, %v2385_v35 }
 0x1f1   : > { %2608 = vst [vmem:[#allocation13_spill] sm:$0xff] %v2381_v33  ;;  %v2383_v34 = vpop.f32.mrb[47].mxu0 }
 0x1f2   : > { %2609 = vst [vmem:[#allocation14_spill] sm:$0xff] %v2383_v34 }
 0x1f4   : > { %803 = vxpose.xlu0.b32.end [16/16] (narrow) %v1771_v15, 8  ;;  %v1017_v15 = vsel %vm967_vm1, %v1940_v13, 0 }
 0x1f5   : > { %1773 = vmatpush3.bf16.xpose.msra.mxu1 %v1017_v15 }
 0x218   : > { %v772_v48 = vpop.trf.xlu1 }
 0x219   : > { %v825_v49 = vadd.f32 %v823_v30, %v772_v48 }
 0x21b   : > { %v827_v54 = vmax.f32 %v825_v49, 0.0  ;;  %v396_v49 = vrot.slane %v2405_v45, %v395_v43 }
 0x21d   : > { %831 = vrot.lane.b32.xlu1 %v827_v54, %s2080_s18  ;;  %1934 = vset.pattern.permute.xlu0 %v2596_v6  ;;  %v829_v55 = vmul.f32 %v827_v54, %v443_v51  ;;  %v400_v51 = vrot.slane %v2414_v60, %v395_v43  ;;  %v401_v15 = vmul.f32 %v396_v49, %v2387_v36 }
 0x21f   : > { %v402_v17 = vmul.f32 %v400_v51, %v2387_v36 }
 0x238   : > { %v804_v0 = vpop.trf.xlu0 }
 0x239   : > { %v826_v2 = vadd.f32 %v823_v30, %v804_v0  ;;  %v2426_v30 = vand.u32 127, %v379_v40  ;;  %v409_v40 = vsub.s32 2, %v2397_v42 }
 0x23b   : > { %v828_v7 = vmax.f32 %v826_v2, 0.0  ;;  %vm837_vm2 = vcmp.lt.s32.totalorder %v2426_v30, 17  ;;  %vm848_vm3 = vcmp.lt.s32.totalorder %v2426_v30, 16  ;;  %v410_v43 = vrot.slane %v2405_v45, %v409_v40 }
 0x23c   : > { %vm859_vm4 = vcmp.lt.s32.totalorder %v2426_v30, 15  ;;  %vm870_vm5 = vcmp.lt.s32.totalorder %v2426_v30, 1  ;;  %vm881_vm6 = vcmp.lt.s32.totalorder %v2426_v30, 127  ;;  %vm892_vm7 = vcmp.lt.s32.totalorder %v2426_v30, 113 }
 0x23d   : > { %846 = vrot.lane.b32.xlu0 %v828_v7, %s2081_s25  ;;  %833 = vrot.lane.b32.xlu1 %v828_v7, %s2080_s18  ;;  %v830_v9 = vmul.f32 %v828_v7, %v444_v4  ;;  %vm903_vm8 = vcmp.lt.s32.totalorder %v2426_v30, 112  ;;  %vm914_vm9 = vcmp.lt.s32.totalorder %v2426_v30, 111  ;;  %v2610_v30 = vmov 0   ;;  %s1686_s18 = sshll.u32 %s2162_s13, 8  ;;  %s2088_s13 = smov [#allocation7]  }
 0x241   : > { %855 = vrot.lane.b32.xlu0 %v827_v54, %s2082_s28  ;;  %844 = vrot.lane.b32.xlu1 %v827_v54, %s2081_s25  ;;  %s2540_s25 = scalar_lea.hbm %s2592_s9, %s1686_s18 }
 0x245   : > { %877 = vrot.lane.b32.xlu0 %v827_v54, %s2083_s21  ;;  %857 = vrot.lane.b32.xlu1 %v828_v7, %s2082_s28  ;;  %s2542_s28 = scalar_lea.sflag [#allocation4], %s349_s17 }
 0x249   : > { %888 = vrot.lane.b32.xlu0 %v827_v54, %s2084_s29  ;;  %866 = vrot.lane.b32.xlu1 %v827_v54, %s2085_s14 }
 0x24d   : > { %899 = vrot.lane.b32.xlu0 %v827_v54, %s2086_s16  ;;  %868 = vrot.lane.b32.xlu1 %v828_v7, %s2085_s14 }
 0x251   : > { %879 = vrot.lane.b32.xlu1 %v828_v7, %s2083_s21  ;;  %923 = vperm.xlu0 %1934, %v363_v11  }
 0x255   : > { %890 = vrot.lane.b32.xlu1 %v828_v7, %s2084_s29  ;;  %s2001_s29 = sshll.u32 %s2088_s13, 4  ;;  %s2002_s29 = int_to_ptr.vmem [resolvable:$false] %s2001_s29 }
 0x256   : > { %s2003_s14 = scalar_lea.vmem %s2002_s29, 512 }
 0x259   : > { %901 = vrot.lane.b32.xlu1 %v828_v7, %s2086_s16 }
 0x25d   : > { %910 = vrot.lane.b32.xlu1 %v827_v54, %s2087_s24  ;;  %v387_v54 = vmul.f32 %v382_v46, %v2385_v35  ;;  %v414_v46 = vrot.slane %v2414_v60, %v409_v40 }
 0x25f   : > { %v416_v49 = vmul.f32 %v414_v46, %v2389_v37 }
 0x261   : > { %912 = vrot.lane.b32.xlu1 %v828_v7, %s2087_s24  ;;  %s351_s24 = scalar_lea.vmem [#allocation7], %s1619_s22 }
 0x262   : > { %s1527_s23 = sshll.u32 %s351_s24, 4  ;;  %s2535_s23 = int_to_ptr.vmem [resolvable:$true] %s1527_s23 }
 0x263   : > { %s1997_s21 = scalar_lea.vmem %s2535_s23, 256  ;;  %p2004_p4 = scmp.lt.s32.totalorder %s2535_s23, %s2002_s29 }
 0x264   : > { %p1998_p12 = scmp.ne.s32.totalorder %s2535_s23, %s1997_s21  ;;  %p2005_p7 = scmp.lt.s32.totalorder %s2003_s14, %s1997_s21 }
 0x266   : > { %p1999_p2 = pnand %p1998_p12, %p2614_p1  ;;  %p2006_p8 = por %p2005_p7, %p2004_p4 }
 0x268   : > { %p2000_p3 = pneg %p1999_p2 }
 0x26a   : > { %p2007_p11 = pnand %p2006_p8, %p2000_p3 }
 0x28f   : > { %v832_v48 = vpop.permute.xlu1 %831 }
 0x2af   : > { %v834_v0 = vpop.permute.xlu1 %833  ;;  %v847_v7 = vpop.permute.xlu0 %846 }
 0x2b0   : > { %v838_v2 = vsel %vm837_vm2, %v832_v48, %v834_v0  ;;  %v839_v4 = vsel %vm837_vm2, %v834_v0, %v832_v48 }
 0x2b1   : > { %v840_v11 = vmul.f32 %v839_v4, %v387_v54  ;;  %v841_v13 = vmul.f32 %v838_v2, %v388_v62  ;;  %v423_v54 = vsub.s32 3, %v2397_v42  ;;  %v415_v62 = vmul.f32 %v410_v43, %v2389_v37 }
 0x2b2   : > { %v465_v37 = vsub.s32 6, %v2397_v42 }
 0x2b3   : > { %v842_v6 = vadd.f32 %v840_v11, %v829_v55  ;;  %v843_v35 = vadd.f32 %v841_v13, %v830_v9  ;;  %v845_v47 = vpop.permute.xlu1 %844  ;;  %v856_v36 = vpop.permute.xlu0 %855 }
 0x2b4   : > { %v849_v33 = vsel %vm848_vm3, %v845_v47, %v847_v7  ;;  %v850_v31 = vsel %vm848_vm3, %v847_v7, %v845_v47  ;;  %v451_v7 = vsub.s32 5, %v2397_v42 }
 0x2b5   : > { %v851_v34 = vmul.f32 %v850_v31, %v401_v15  ;;  %v852_v48 = vmul.f32 %v849_v33, %v402_v17  ;;  %v424_v31 = vrot.slane %v2405_v45, %v423_v54  ;;  %v428_v33 = vrot.slane %v2414_v60, %v423_v54 }
 0x2b6   : > { %v452_v17 = vrot.slane %v2405_v45, %v451_v7  ;;  %v456_v43 = vrot.slane %v2414_v60, %v451_v7 }
 0x2b7   : > { %v853_v51 = vadd.f32 %v851_v34, %v842_v6  ;;  %v854_v0 = vadd.f32 %v852_v48, %v843_v35  ;;  %v858_v2 = vpop.permute.xlu1 %857  ;;  %v429_v6 = vmul.f32 %v424_v31, %v2391_v38  ;;  %v430_v34 = vmul.f32 %v428_v33, %v2391_v38  ;;  %v878_v48 = vpop.permute.xlu0 %877 }
 0x2b8   : > { %v860_v40 = vsel %vm859_vm4, %v856_v36, %v858_v2  ;;  %v861_v55 = vsel %vm859_vm4, %v858_v2, %v856_v36  ;;  %v470_v36 = vrot.slane %v2414_v60, %v465_v37  ;;  %v458_v38 = vmul.f32 %v456_v43, %v2393_v39 }
 0x2b9   : > { %v862_v9 = vmul.f32 %v861_v55, %v415_v62  ;;  %v863_v4 = vmul.f32 %v860_v40, %v416_v49  ;;  %v466_v49 = vrot.slane %v2405_v45, %v465_v37  ;;  %v479_v31 = vsub.s32 7, %v2397_v42 }
 0x2bb   : > { %v864_v11 = vadd.f32 %v862_v9, %v853_v51  ;;  %v865_v13 = vadd.f32 %v863_v4, %v854_v0  ;;  %v867_v15 = vpop.permute.xlu1 %866  ;;  %v457_v51 = vmul.f32 %v452_v17, %v2393_v39  ;;  %v471_v33 = vmul.f32 %v466_v49, %v2395_v41  ;;  %v889_v37 = vpop.permute.xlu0 %888 }
 0x2bf   : > { %v869_v46 = vpop.permute.xlu1 %868 }
 0x2c0   : > { %v871_v35 = vsel %vm870_vm5, %v867_v15, %v869_v46  ;;  %v872_v47 = vsel %vm870_vm5, %v869_v46, %v867_v15  ;;  %v472_v15 = vmul.f32 %v470_v36, %v2395_v41  ;;  %v480_v46 = vrot.slane %v2405_v45, %v479_v31  ;;  %v1623_v45 = vld [vmem:[%s2591_s8 + $0x18] ss:$0 sm:$0xff] }
 0x2c1   : > { %v873_v54 = vmul.f32 %v872_v47, %v429_v6  ;;  %v874_v62 = vmul.f32 %v871_v35, %v430_v34  ;;  %v484_v35 = vrot.slane %v2414_v60, %v479_v31 }
 0x2c2   : > { %v485_v49 = vmul.f32 %v480_v46, %v2400_v44 }
 0x2c3   : > { %v875_v0 = vadd.f32 %v873_v54, %v864_v11  ;;  %v876_v2 = vadd.f32 %v874_v62, %v865_v13  ;;  %v880_v40 = vpop.permute.xlu1 %879  ;;  %v900_v54 = vpop.permute.xlu0 %899  ;;  %v486_v36 = vmul.f32 %v484_v35, %v2400_v44 }
 0x2c4   : > { %v882_v55 = vsel %vm881_vm6, %v878_v48, %v880_v40  ;;  %v883_v9 = vsel %vm881_vm6, %v880_v40, %v878_v48  ;;  %v500_v40 = vmul.f32 %v1623_v45, %v2409_v58 }
 0x2c5   : > { %v884_v4 = vmul.f32 %v882_v55, %v457_v51  ;;  %v885_v7 = vmul.f32 %v883_v9, %v458_v38  ;;  %v1622_v38 = vld [vmem:[%s2591_s8 + $0x10] ss:$0 sm:$0xff] }
 0x2c7   : > { %v886_v6 = vadd.f32 %v884_v4, %v875_v0  ;;  %v887_v34 = vadd.f32 %v885_v7, %v876_v2  ;;  %v891_v17 = vpop.permute.xlu1 %890  ;;  %v499_v2 = vmul.f32 %v1622_v38, %v2409_v58  ;;  %v366_v58 = vld [vmem:[%s2589_s6] sm:$0xff] }
 0x2c8   : > { %v893_v39 = vsel %vm892_vm7, %v889_v37, %v891_v17  ;;  %v894_v11 = vsel %vm892_vm7, %v891_v17, %v889_v37 }
 0x2c9   : > { %v895_v13 = vmul.f32 %v893_v39, %v471_v33  ;;  %v896_v43 = vmul.f32 %v894_v11, %v472_v15 }
 0x2cb   : > { %v897_v47 = vadd.f32 %v895_v13, %v886_v6  ;;  %v898_v48 = vadd.f32 %v896_v43, %v887_v34  ;;  %v902_v42 = vpop.permute.xlu1 %901  ;;  %v367_v13 = vld [vmem:[%s2589_s6 + $0x8] sm:$0xff] }
 0x2cc   : > { %v904_v62 = vsel %vm903_vm8, %v900_v54, %v902_v42  ;;  %v905_v41 = vsel %vm903_vm8, %v902_v42, %v900_v54 }
 0x2cd   : > { %v906_v60 = vmul.f32 %v904_v62, %v485_v49  ;;  %v907_v0 = vmul.f32 %v905_v41, %v486_v36 }
 0x2cf   : > { %v911_v51 = vpop.permute.xlu1 %910  ;;  %v908_v4 = vadd.f32 %v906_v60, %v897_v47  ;;  %v909_v7 = vadd.f32 %v907_v0, %v898_v48 }
 0x2d0   : > { %v924_v15 = vpop.permute.xlu0 %923 }
 0x2d3   : > { %v913_v55 = vpop.permute.xlu1 %912 }
 0x2d4   : > { %v915_v9 = vsel %vm914_vm9, %v911_v51, %v913_v55  ;;  %v916_v44 = vsel %vm914_vm9, %v913_v55, %v911_v51 }
 0x2d5   : > { %v917_v31 = vmul.f32 %v915_v9, %v499_v2  ;;  %v918_v33 = vmul.f32 %v916_v44, %v500_v40 }
 0x2d7   : > { %v919_v37 = vadd.f32 %v917_v31, %v908_v4  ;;  %v920_v6 = vadd.f32 %v918_v33, %v909_v7 }
 0x2d9   : > { %v926_v34 = vadd.f32 %v924_v15, %v919_v37  ;;  %v927_v17 = vadd.f32 %v924_v15, %v920_v6 }
 0x2db   : > { %v928_v39 = vpack.c.bf16 %v926_v34, %v926_v34  ;;  %v929_v11 = vpack.c.bf16 %v927_v17, %v927_v17 }
 0x2dd   : > { %930 = vxpose.xlu0.c.b16.start.end [1/1] (short) %v928_v39, 128  ;;  %946 = vxpose.xlu1.c.b16.start.end [1/1] (short) %v929_v11, 128 }
 0x2e1   : > { %1935 = vset.pattern.permute.xlu1 %v2610_v30 }
 0x2fd   : > { %1251 = vperm.xlu1 %1935, %v367_v13  }
 0x302   : > { %1246 = vperm.xlu0 %1934, %v366_v58  }
 0x343   : > { %v938_v43 = vpop.trf.xlu0  ;;  %v954_v54 = vpop.trf.xlu1 }
 0x344   : > { %1774 = vmatprep.mubr.msk.bf16.mxu1 %vm967_vm1, %v938_v43 }
 0x347   : > { %v939_v46 = vpop.trf.xlu0  ;;  %v955_v49 = vpop.trf.xlu1 }
 0x348   : > { %1775 = vmatmul.mubr.msk.bf16.vlgmr.msra.gmra.mrb[16].mxu1 %vm967_vm1, %v939_v46 }
 0x34b   : > { %v940_v35 = vpop.trf.xlu0  ;;  %v956_v36 = vpop.trf.xlu1 }
 0x34c   : > { %1778 = vmatprep.mubr.msk.bf16.mxu1 %vm967_vm1, %v940_v35 }
 0x34f   : > { %v941_v47 = vpop.trf.xlu0  ;;  %v957_v51 = vpop.trf.xlu1 }
 0x350   : > { %1779 = vmatmul.mubr.msk.bf16.gmra.mrb[20].mxu1 %vm967_vm1, %v941_v47 }
 0x353   : > { %v942_v48 = vpop.trf.xlu0  ;;  %v958_v38 = vpop.trf.xlu1 }
 0x354   : > { %1782 = vmatprep.mubr.msk.bf16.mxu1 %vm967_vm1, %v942_v48 }
 0x357   : > { %v943_v42 = vpop.trf.xlu0  ;;  %v959_v45 = vpop.trf.xlu1 }
 0x358   : > { %1783 = vmatmul.mubr.msk.bf16.gmra.mrb[24].mxu1 %vm967_vm1, %v943_v42 }
 0x35b   : > { %v944_v62 = vpop.trf.xlu0  ;;  %v960_v60 = vpop.trf.xlu1 }
 0x35c   : > { %1786 = vmatprep.mubr.msk.bf16.mxu1 %vm967_vm1, %v944_v62 }
 0x35f   : > { %v945_v41 = vpop.trf.xlu0  ;;  %v961_v0 = vpop.trf.xlu1 }
 0x360   : > { %1787 = vmatmul.mubr.msk.bf16.gmra.mrb[28].mxu1 %vm967_vm1, %v945_v41 }
 0x361   : > { %1790 = vmatprep.mubr.msk.bf16.mxu1 %vm967_vm1, %v954_v54 }
 0x368   : > { %1791 = vmatmul.mubr.msk.bf16.gmra.mrb[32].mxu1 %vm967_vm1, %v955_v49 }
 0x369   : > { %1794 = vmatprep.mubr.msk.bf16.mxu1 %vm967_vm1, %v956_v36 }
 0x370   : > { %1795 = vmatmul.mubr.msk.bf16.gmra.mrb[36].mxu1 %vm967_vm1, %v957_v51 }
 0x371   : > { %1798 = vmatprep.mubr.msk.bf16.mxu1 %vm967_vm1, %v958_v38 }
 0x378   : > { %1799 = vmatmul.mubr.msk.bf16.gmra.mrb[40].mxu1 %vm967_vm1, %v959_v45 }
 0x379   : > { %1802 = vmatprep.mubr.msk.bf16.mxu1 %vm967_vm1, %v960_v60 }
 0x380   : > { %1803 = vmatmul.mubr.msk.bf16.gmra.mrb[44].mxu1 %vm967_vm1, %v961_v0 }
 0x41b   : > { %v1776_v2 = vpop.f32.mrb[16].mxu1 }
 0x41c   : > { %v1053_v40 = vpop.f32.mrb[17].mxu1 }
 0x41d   : > { %1180 = vxpose.xlu0.b32.start [1/16] (narrow) %v1053_v40, 16  ;;  %v1777_v55 = vpop.f32.mrb[18].mxu1 }
 0x41e   : > { %v1056_v9 = vpop.f32.mrb[19].mxu1 }
 0x421   : > { %1181 = vxpose.xlu0.b32.cont [2/16] (narrow) %v1056_v9, 16 }
 0x423   : > { %v1780_v44 = vpop.f32.mrb[20].mxu1 }
 0x424   : > { %v1069_v4 = vpop.f32.mrb[21].mxu1 }
 0x425   : > { %1182 = vxpose.xlu0.b32.cont [3/16] (narrow) %v1776_v2, 16  ;;  %v1781_v7 = vpop.f32.mrb[22].mxu1 }
 0x426   : > { %v1072_v31 = vpop.f32.mrb[23].mxu1 }
 0x429   : > { %1183 = vxpose.xlu0.b32.cont [4/16] (narrow) %v1777_v55, 16 }
 0x42b   : > { %v1784_v33 = vpop.f32.mrb[24].mxu1 }
 0x42c   : > { %v1085_v15 = vpop.f32.mrb[25].mxu1 }
 0x42d   : > { %1184 = vxpose.xlu0.b32.cont [5/16] (narrow) %v1069_v4, 16  ;;  %v1785_v37 = vpop.f32.mrb[26].mxu1 }
 0x42e   : > { %v1088_v6 = vpop.f32.mrb[27].mxu1 }
 0x431   : > { %1185 = vxpose.xlu0.b32.cont [6/16] (narrow) %v1072_v31, 16 }
 0x433   : > { %v1788_v34 = vpop.f32.mrb[28].mxu1 }
 0x434   : > { %v1101_v17 = vpop.f32.mrb[29].mxu1 }
 0x435   : > { %1186 = vxpose.xlu0.b32.cont [7/16] (narrow) %v1780_v44, 16  ;;  %v1789_v39 = vpop.f32.mrb[30].mxu1 }
 0x436   : > { %v1104_v11 = vpop.f32.mrb[31].mxu1 }
 0x439   : > { %1187 = vxpose.xlu0.b32.cont [8/16] (narrow) %v1781_v7, 16 }
 0x43b   : > { %v1792_v30 = vpop.f32.mrb[32].mxu1 }
 0x43c   : > { %v1117_v58 = vpop.f32.mrb[33].mxu1 }
 0x43d   : > { %1188 = vxpose.xlu0.b32.cont [9/16] (narrow) %v1085_v15, 16  ;;  %1212 = vxpose.xlu1.b32.start [1/16] (narrow) %v1117_v58, 16  ;;  %v1793_v13 = vpop.f32.mrb[34].mxu1 }
 0x43e   : > { %v1120_v43 = vpop.f32.mrb[35].mxu1 }
 0x441   : > { %1189 = vxpose.xlu0.b32.cont [10/16] (narrow) %v1088_v6, 16  ;;  %1213 = vxpose.xlu1.b32.cont [2/16] (narrow) %v1120_v43, 16 }
 0x443   : > { %v1796_v46 = vpop.f32.mrb[36].mxu1 }
 0x444   : > { %v1133_v35 = vpop.f32.mrb[37].mxu1 }
 0x445   : > { %1190 = vxpose.xlu0.b32.cont [11/16] (narrow) %v1784_v33, 16  ;;  %1214 = vxpose.xlu1.b32.cont [3/16] (narrow) %v1792_v30, 16  ;;  %v1797_v47 = vpop.f32.mrb[38].mxu1 }
 0x446   : > { %v1136_v48 = vpop.f32.mrb[39].mxu1 }
 0x449   : > { %1191 = vxpose.xlu0.b32.cont [12/16] (narrow) %v1785_v37, 16  ;;  %1215 = vxpose.xlu1.b32.cont [4/16] (narrow) %v1793_v13, 16 }
 0x44b   : > { %v1800_v42 = vpop.f32.mrb[40].mxu1 }
 0x44c   : > { %v1149_v54 = vpop.f32.mrb[41].mxu1 }
 0x44d   : > { %1192 = vxpose.xlu0.b32.cont [13/16] (narrow) %v1101_v17, 16  ;;  %1216 = vxpose.xlu1.b32.cont [5/16] (narrow) %v1133_v35, 16  ;;  %v1801_v62 = vpop.f32.mrb[42].mxu1 }
 0x44e   : > { %v1152_v41 = vpop.f32.mrb[43].mxu1 }
 0x451   : > { %1193 = vxpose.xlu0.b32.cont [14/16] (narrow) %v1104_v11, 16  ;;  %1217 = vxpose.xlu1.b32.cont [6/16] (narrow) %v1136_v48, 16 }
 0x453   : > { %v1804_v49 = vpop.f32.mrb[44].mxu1 }
 0x454   : > { %v1165_v36 = vpop.f32.mrb[45].mxu1 }
 0x455   : > { %1194 = vxpose.xlu0.b32.cont [15/16] (narrow) %v1788_v34, 16  ;;  %1218 = vxpose.xlu1.b32.cont [7/16] (narrow) %v1796_v46, 16  ;;  %v1805_v51 = vpop.f32.mrb[46].mxu1 }
 0x456   : > { %v1168_v38 = vpop.f32.mrb[47].mxu1 }
 0x459   : > { %1195 = vxpose.xlu0.b32.end [16/16] (narrow) %v1789_v39, 16  ;;  %1219 = vxpose.xlu1.b32.cont [8/16] (narrow) %v1797_v47, 16 }
 0x45d   : > { %1431 = vxpose.xlu0.b32.start [1/16] (narrow) %v2323_v52, 16  ;;  %1220 = vxpose.xlu1.b32.cont [9/16] (narrow) %v1149_v54, 16  ;;  %v2612_v52 = vld [vmem:[#allocation12_spill] sm:$0xff] }
 0x461   : > { %1432 = vxpose.xlu0.b32.cont [2/16] (narrow) %v2327_v56, 16  ;;  %1221 = vxpose.xlu1.b32.cont [10/16] (narrow) %v1152_v41, 16  ;;  %v1247_v56 = vpop.permute.xlu0 %1246 }
 0x465   : > { %1433 = vxpose.xlu0.b32.cont [3/16] (narrow) %v2321_v50, 16  ;;  %1222 = vxpose.xlu1.b32.cont [11/16] (narrow) %v1800_v42, 16  ;;  %v2611_v50 = vld [vmem:[#allocation14_spill] sm:$0xff] }
 0x469   : > { %1434 = vxpose.xlu0.b32.cont [4/16] (narrow) %v2325_v53, 16  ;;  %1223 = vxpose.xlu1.b32.cont [12/16] (narrow) %v1801_v62, 16  ;;  %v2613_v53 = vld [vmem:[#allocation13_spill] sm:$0xff] }
 0x46d   : > { %1435 = vxpose.xlu0.b32.cont [5/16] (narrow) %v2331_v59, 16  ;;  %1224 = vxpose.xlu1.b32.cont [13/16] (narrow) %v1165_v36, 16 }
 0x471   : > { %1436 = vxpose.xlu0.b32.cont [6/16] (narrow) %v2335_v63, 16  ;;  %1225 = vxpose.xlu1.b32.cont [14/16] (narrow) %v1168_v38, 16 }
 0x475   : > { %1437 = vxpose.xlu0.b32.cont [7/16] (narrow) %v2329_v57, 16  ;;  %1226 = vxpose.xlu1.b32.cont [15/16] (narrow) %v1804_v49, 16  ;;  %v1252_v57 = vpop.permute.xlu1 %1251 }
 0x479   : > { %1438 = vxpose.xlu0.b32.cont [8/16] (narrow) %v2333_v61, 16  ;;  %1227 = vxpose.xlu1.b32.end [16/16] (narrow) %v1805_v51, 16 }
 0x47d   : > { %1439 = vxpose.xlu0.b32.cont [9/16] (narrow) %v2339_v3, 16  ;;  %1463 = vxpose.xlu1.b32.start [1/16] (narrow) %v2355_v19, 16 }
 0x481   : > { %1440 = vxpose.xlu0.b32.cont [10/16] (narrow) %v2343_v8, 16  ;;  %1464 = vxpose.xlu1.b32.cont [2/16] (narrow) %v2359_v21, 16 }
 0x485   : > { %1441 = vxpose.xlu0.b32.cont [11/16] (narrow) %v2337_v1, 16  ;;  %1465 = vxpose.xlu1.b32.cont [3/16] (narrow) %v2353_v18, 16 }
 0x489   : > { %1442 = vxpose.xlu0.b32.cont [12/16] (narrow) %v2341_v5, 16  ;;  %1466 = vxpose.xlu1.b32.cont [4/16] (narrow) %v2357_v20, 16 }
 0x48d   : > { %1443 = vxpose.xlu0.b32.cont [13/16] (narrow) %v2347_v12, 16  ;;  %1467 = vxpose.xlu1.b32.cont [5/16] (narrow) %v2363_v23, 16 }
 0x491   : > { %1444 = vxpose.xlu0.b32.cont [14/16] (narrow) %v2351_v16, 16  ;;  %1468 = vxpose.xlu1.b32.cont [6/16] (narrow) %v2367_v25, 16 }
 0x495   : > { %1445 = vxpose.xlu0.b32.cont [15/16] (narrow) %v2345_v10, 16  ;;  %1469 = vxpose.xlu1.b32.cont [7/16] (narrow) %v2361_v22, 16 }
 0x499   : > { %1446 = vxpose.xlu0.b32.end [16/16] (narrow) %v2349_v14, 16  ;;  %1470 = vxpose.xlu1.b32.cont [8/16] (narrow) %v2365_v24, 16 }
 0x49d   : > { %1471 = vxpose.xlu1.b32.cont [9/16] (narrow) %v2371_v27, 16  ;;  %v1196_v59 = vpop.trf.xlu0 }
 0x49e   : > { %v1254_v1 = vadd.f32 %v1247_v56, %v1196_v59 }
 0x4a0   : > { %v1258_v10 = vmax.f32 %v1254_v1, 0.0 }
 0x4a1   : > { %1472 = vxpose.xlu1.b32.cont [10/16] (narrow) %v2375_v29, 16  ;;  %v1197_v63 = vpop.trf.xlu0 }
 0x4a2   : > { %v1256_v12 = vadd.f32 %v1252_v57, %v1197_v63 }
 0x4a4   : > { %v1260_v22 = vmax.f32 %v1256_v12, 0.0 }
 0x4a5   : > { %1473 = vxpose.xlu1.b32.cont [11/16] (narrow) %v2369_v26, 16 }
 0x4a9   : > { %1474 = vxpose.xlu1.b32.cont [12/16] (narrow) %v2373_v28, 16 }
 0x4ad   : > { %1475 = vxpose.xlu1.b32.cont [13/16] (narrow) %v2379_v32, 16 }
 0x4b1   : > { %1476 = vxpose.xlu1.b32.cont [14/16] (narrow) %v2611_v50, 16 }
 0x4b5   : > { %1477 = vxpose.xlu1.b32.cont [15/16] (narrow) %v2612_v52, 16 }
 0x4b9   : > { %1478 = vxpose.xlu1.b32.end [16/16] (narrow) %v2613_v53, 16 }
 0x4bd   : > { %v1228_v61 = vpop.trf.xlu1 }
 0x4be   : > { %v1255_v3 = vadd.f32 %v1247_v56, %v1228_v61 }
 0x4c0   : > { %v1259_v14 = vmax.f32 %v1255_v3, 0.0 }
 0x4c1   : > { %v1229_v5 = vpop.trf.xlu1 }
 0x4c2   : > { %v1257_v16 = vadd.f32 %v1252_v57, %v1229_v5 }
 0x4c4   : > { %v1261_v23 = vmax.f32 %v1257_v16, 0.0 }
 0x4dd   : > { %v1447_v8 = vpop.trf.xlu0 }
 0x4de   : > { %v1495_v19 = vadd.f32 %v1447_v8, %v1258_v10 }
 0x4e1   : > { %v1448_v21 = vpop.trf.xlu0 }
 0x4e2   : > { %v1497_v26 = vadd.f32 %v1448_v21, %v1260_v22 }
 0x4fd   : > { %v1479_v18 = vpop.trf.xlu1 }
 0x4fe   : > { %v1496_v20 = vadd.f32 %v1479_v18, %v1259_v14 }
 0x500   : > { %v1684_v24 = vpack.c.bf16 %v1496_v20, %v1495_v19 }
 0x501   : > { %v1480_v25 = vpop.trf.xlu1 }
 0x502   : > { %1511 = vst [vmem:[%s351_s24] sm:$0xff] %v1684_v24  ;;  %v1498_v27 = vadd.f32 %v1480_v25, %v1261_v23 }
 0x504   : > { %v1685_v28 = vpack.c.bf16 %v1498_v27, %v1497_v26 }
 0x506   : > { %1512 = vst [vmem:[%s351_s24 + $0x8] sm:$0xff] %v1685_v28 }
 0x507   : > { %2010 = shalt.err (!%p2007_p11)
}
 0x508   : > { %s2011_s16 = scalar_lea.hbm %s2540_s25, 256  ;;  %s2015_s24 = scalar_lea.hbm %s2592_s9, 512 }
 0x509   : > { %p2012_p13 = scmp.ne.s32.totalorder %s2540_s25, %s2011_s16  ;;  %p2016_p5 = scmp.lt.u32.totalorder %s2540_s25, %s2592_s9 }
 0x50a   : > { %p2017_p9 = scmp.lt.u32.totalorder %s2015_s24, %s2011_s16  ;;  %p2019_p12 = scmp.lt.u32.totalorder %s2011_s16, %s2540_s25 }
 0x50b   : > { %p2013_p6 = pnand %p2012_p13, %p2614_p1 }
 0x50c   : > { %p2018_p10 = por %p2017_p9, %p2016_p5 }
 0x50d   : > { %p2014_p0 = pneg %p2013_p6 }
 0x50e   : > { %p2020_p2 = por %p2019_p12, %p2018_p10 }
 0x510   : > { %p2021_p3 = pnand %p2020_p2, %p2014_p0 }
 0x512   : > { %2024 = shalt.err (!%p2021_p3)
}
 0x513   : > { %s2089_s26 = smov 128   ;;  %s2090_s21 = smov 8  }
 0x514   : > { %1854 = dma.vmem_to_hbm [thread:$0]  (%p2614_p1), %s2535_s23, 256, %s2540_s25, %s2542_s28, %s2089_s26, %s2089_s26, %s2090_s21  }
 0x515 PF: > { %p1871_p4 = scmp.ge.s32.totalorder %s2067_s12, 2  ;;  %s1542_s13 = sand.u32 1, %s2055_s30  }
 0x516   : > { %p2615_p7 = scmp.ne.s32.totalorder %s2599_s20, 0  ;;  %s1543_s29 = scalar_lea.sflag [#allocation4], %s1542_s13 }
 0x518   : > { %p1864_p8 = pnand %p1871_p4, %p2615_p7 }
 0x51a   : > { %2050 = dma.done.wait (!%p1864_p8), %s1543_s29, 256  }
 0x51b   : > { %2052 = vsyncadd (!%p1864_p8), %s1543_s29, 4294967040  ;;  %s2616_s14 = sld [smem:[#allocation11_spill]]  ;;  %p21_p11 = scmp.ge.s32.totalorder %s2166_s15, 4  }
 0x51c   : > { %s2617_s30 = smov %s2059_s10  ;;  %s2618_s10 = smov %s2063_s11 }
 0x51d   : > { %s2620_s12 = smov %s2166_s15  ;;  %23 = sbr.rel (!%p21_p11) target bundleno = 5 (0x5), region = 100 }
 0x521   : > { %s2619_s11 = smov %s2616_s14 }
 0x524   :  { %1548 = vsyncpa [#allocation3], 1 }
 0x525   :  { %1550 = vsyncpa [#allocation3 + $0x1], 1 }
 0x526   :  { %1551 = vsyncpa [#allocation6], 1 }
 0x527   :  { %1552 = vsyncpa [#allocation4], 1 }
 0x528   :  { %1554 = vsyncpa [#allocation4 + $0x1], 1 }

</bundles_post_ra>
